<compile_context>
chip_gen: v6e
topology: v6e:2x2x1
jax: 0.10.0
libtpu: 0.0.40
codegen_flags: <defaults>
</compile_context>

<pallas_src>
import jax
import jax.numpy as jnp
from jax.experimental import pallas as pl
from jax.experimental.pallas import tpu as pltpu


def _identity_kernel(x_ref, o_ref):
    # The entire forward pass of nn.Identity: copy input tile -> output tile.
    o_ref[...] = x_ref[...]


_LANES = 128
_TARGET_BLOCK_BYTES = 2 * 1024 * 1024  # ~2 MiB per block


def _sublane_pack(itemsize: int) -> int:
    # Rows per packed vreg tile: 8 for >=32-bit, 16 for 16-bit, 32 for 8-bit.
    if itemsize >= 4:
        return 8
    if itemsize == 2:
        return 16
    return 32


def identity(x: jax.Array) -> jax.Array:
    """Identity forward: returns x unchanged (same shape, same dtype)."""
    if x.size == 0 or x.ndim == 0:
        # Degenerate inputs: nothing to copy / nothing to tile.
        return x

    total = x.size
    itemsize = jnp.dtype(x.dtype).itemsize

    if total % _LANES != 0:
        # Rare ragged case (element count not a multiple of 128): run the copy
        # as a single whole-array block in VMEM.
        # TODO(synk): tile this path too if huge non-128-multiple tensors show up.
        return pl.pallas_call(
            _identity_kernel,
            out_shape=jax.ShapeDtypeStruct(x.shape, x.dtype),
            input_output_aliases={0: 0},
        )(x)

    # Pick the widest lane-dense last dim (multiple of 128) that divides the
    # element count; wide last dims give unmasked wide stores and fewer DMA
    # descriptors per byte.
    width = _LANES
    for cand in (8192, 4096, 2048, 1024, 512, 256, 128):
        if total % cand == 0:
            width = cand
            break
    rows = total // width

    # Reshape of contiguous row-major data is a free bitcast (no HBM copy).
    x2d = x.reshape(rows, width)

    pack = _sublane_pack(itemsize)
    tile_rows = max(pack, (_TARGET_BLOCK_BYTES // (width * itemsize)) // pack * pack)
    if tile_rows >= rows:
        # Single block == full array, which is always a legal block shape.
        tile_rows = rows
    grid = (pl.cdiv(rows, tile_rows),)

    out2d = pl.pallas_call(
        _identity_kernel,
        out_shape=jax.ShapeDtypeStruct((rows, width), x.dtype),
        grid=grid,
        in_specs=[pl.BlockSpec((tile_rows, width), lambda i: (i, 0))],
        out_specs=pl.BlockSpec((tile_rows, width), lambda i: (i, 0)),
        input_output_aliases={0: 0},
        compiler_params=pltpu.CompilerParams(
            dimension_semantics=("parallel",),
        ),
    )(x2d)

    return out2d.reshape(x.shape)


if __name__ == "__main__":
    key = jax.random.PRNGKey(0)
    # Small NCHW input consistent with typical conv-net usage of this module.
    x = jax.random.normal(key, (2, 4, 16, 16), dtype=jnp.float32)

    y = jax.jit(identity)(x)
    jax.block_until_ready(y)

    assert y.shape == x.shape, (y.shape, x.shape)
    assert y.dtype == x.dtype, (y.dtype, x.dtype)
    assert bool(jnp.all(y == x)), "Identity output mismatch"

    print("KERNEL_OK")
</pallas_src>

<mosaic_0001>
module attributes {stable_mosaic.version = 11 : i64} {
  func.func @_identity_kernel(%arg0: i32, %arg1: memref<1x2048xf32, #tpu.memory_space<vmem>>, %arg2: memref<1x2048xf32, #tpu.memory_space<vmem>>) attributes {dimension_semantics = [#tpu.dimension_semantics<parallel>], iteration_bounds = array<i64: 1>, scalar_prefetch = 0 : i64, scratch_operands = 0 : i64, tpu.core_type = #tpu.core_type<tc>, window_params = [{transform_indices = @transform_0, window_bounds = array<i64: 1, 2048>}, {transform_indices = @transform_1, window_bounds = array<i64: 1, 2048>}]} {
    %c0 = arith.constant 0 : index
    %c0_0 = arith.constant 0 : index
    %0 = vector.load %arg1[%c0, %c0_0] : memref<1x2048xf32, #tpu.memory_space<vmem>>, vector<1x2048xf32>
    %c0_1 = arith.constant 0 : index
    %c0_2 = arith.constant 0 : index
    %1 = vector.load %arg2[%c0_1, %c0_2] : memref<1x2048xf32, #tpu.memory_space<vmem>>, vector<1x2048xf32>
    tpu.vector_store %arg2[%c0_1, %c0_2], %0 {strides = array<i32>} : memref<1x2048xf32, #tpu.memory_space<vmem>>, vector<1x2048xf32>,
    return
  }
  func.func @transform_0(%arg0: i32) -> (i32, i32) {
    %c0_i32 = arith.constant 0 : i32
    %c0_i32_0 = arith.constant 0 : i32
    return %arg0, %c0_i32 : i32, i32
  }
  func.func @transform_1(%arg0: i32) -> (i32, i32) {
    %c0_i32 = arith.constant 0 : i32
    %c0_i32_0 = arith.constant 0 : i32
    return %arg0, %c0_i32 : i32, i32
  }
}

</mosaic_0001>

<bundles_post_ra>
// kernel: identity.1
= control target key start
LH: loop header
LB: loop body
LE: loop exit
PB: predicated region body
PF: predicated region fallthrough
CT: control target
= control target key end

     0   :  { %s38_s0 = inlined_call_operand.vmem [shape: f32[1,2048], index: 0, kind: input, shape index: {}, may-alias: {0,1}]   ;;  %s39_s1 = inlined_call_operand.vmem [shape: f32[1,2048], index: 1, kind: output, shape index: {}, may-alias: {0,1}]  }
   0x1   :  { %v8_v0 = vld [vmem:[%s38_s0] sm:$0xff]  ;;  %v9_v1 = vld [vmem:[%s38_s0 + $0x8] sm:$0xff] }
   0x2   :  { %10 = vst [vmem:[%s39_s1] sm:$0xff] %v8_v0  ;;  %11 = vst [vmem:[%s39_s1 + $0x8] sm:$0xff] %v9_v1 }

</bundles_post_ra>
